<compile_context>
chip_gen: v7x
topology: tpu7x:2x2x1
jax: 0.10.0
libtpu: 0.0.40
codegen_flags: <defaults>
</compile_context>

<pallas_src>
import functools

import jax
import jax.numpy as jnp
from jax.experimental import pallas as pl
from jax.experimental.pallas import tpu as pltpu


def _round_up(x, m):
    return ((x + m - 1) // m) * m


# ------------------------------------------------------------------ kernel ---
def _descriminator_kernel(x_ref,
                          w1_ref, b1_ref,
                          w2_ref, b2_ref,
                          w3_ref, b3_ref,
                          w4_ref, b4_ref,
                          w5_ref, b5_ref,
                          o_ref,
                          *, fc5_elementwise):
    """One batch tile of the fused 5-layer MLP.

    TODO(synk): nn.Dropout(p=0.5) is stochastic in train mode; implemented
    here as eval-mode identity (standard inference semantics).
    """
    h = x_ref[...].astype(jnp.float32)

    # fc1 .. fc4 : tanh(x @ W + b)
    # bf16 matmul operands (native MXU path on v5e/v6e/v7x), f32 accumulate;
    # tanh is done in f32 so the v5e VPU/EUP (no bf16 datapath) stays happy.
    for w_ref, b_ref in ((w1_ref, b1_ref), (w2_ref, b2_ref),
                         (w3_ref, b3_ref), (w4_ref, b4_ref)):
        acc = jnp.dot(h.astype(jnp.bfloat16), w_ref[...],
                      preferred_element_type=jnp.float32) + b_ref[...]
        h = jnp.tanh(acc)

    # fc5 : sigmoid(x @ W + b)
    if fc5_elementwise:
        # out_features == 1: a width-1 MXU matmul wastes a whole 128-wide
        # pass; VPU multiply + lane reduction overlaps with other slots.
        logits = jnp.sum(h * w5_ref[...], axis=-1, keepdims=True) + b5_ref[...]
    else:
        logits = jnp.dot(h.astype(jnp.bfloat16), w5_ref[...],
                         preferred_element_type=jnp.float32) + b5_ref[...]

    o_ref[...] = jax.nn.sigmoid(logits).astype(o_ref.dtype)


# ----------------------------------------------------------------- wrapper ---
@functools.partial(jax.jit, static_argnames=("batch_tile",))
def descriminator_forward(x, params, *, batch_tile=512):
    """x: [B, des_fc1_in] float32.  params: dict of (W[in,out], b[1,out])."""
    B, d_in = x.shape
    layers = [params[k] for k in ("fc1", "fc2", "fc3", "fc4", "fc5")]
    dims_in = [w.shape[0] for w, _ in layers]
    dims_out = [w.shape[1] for w, _ in layers]
    d_out = dims_out[-1]
    fc5_elementwise = (d_out == 1)

    # ---- batch tiling ------------------------------------------------------
    # Big tiles amortize the ~0.35us-per-grid-step pipeline overhead; tile is
    # a multiple of 16 for bf16 sublane packing.  Batch is padded instead of
    # asserting divisibility; padded rows are sliced off at the end.
    b_aligned = _round_up(B, 16)
    tile = min(batch_tile, b_aligned)
    if b_aligned // tile < 2 and b_aligned >= 32:
        # Keep >=2 grid steps so the "parallel" batch axis can shard across
        # the two TensorCores per chip on v7x (harmless on v5e/v6e).
        tile = _round_up(pl.cdiv(b_aligned, 2), 16)
    grid_len = pl.cdiv(B, tile)
    b_pad = grid_len * tile
    if b_pad != B:
        x = jnp.pad(x, ((0, b_pad - B), (0, 0)))

    # ---- parameter prep ----------------------------------------------------
    # fc1..fc4 weights cast once to bf16 (MXU-native operands, half the DMA);
    # biases stay f32.  fc5 (out==1) is pre-transposed to a lane-dense (1, d4)
    # f32 row for the VPU path.
    def resident_spec(shape):
        # Constant block index across the grid -> Pallas fetches these once
        # and never re-issues the DMA; weights stay resident in VMEM.
        return pl.BlockSpec(shape, lambda i: (0, 0))

    flat_params = []
    in_specs = [pl.BlockSpec((tile, d_in), lambda i: (i, 0))]
    for idx, (w, b) in enumerate(layers):
        if idx == 4 and fc5_elementwise:
            w_prep = w.astype(jnp.float32).T            # (1, d4) row
        else:
            w_prep = w.astype(jnp.bfloat16)             # (in, out)
        b_prep = b.astype(jnp.float32).reshape(1, -1)   # (1, out)
        flat_params.extend([w_prep, b_prep])
        in_specs.append(resident_spec(w_prep.shape))
        in_specs.append(resident_spec(b_prep.shape))

    out_spec = pl.BlockSpec((tile, d_out), lambda i: (i, 0))

    # ---- advisory cost estimate -------------------------------------------
    flops = 2 * b_pad * sum(di * do for di, do in zip(dims_in, dims_out))
    transcendentals = b_pad * sum(dims_out)
    bytes_accessed = 4 * b_pad * (d_in + d_out)
    for w_p, b_p in zip(flat_params[::2], flat_params[1::2]):
        bytes_accessed += int(w_p.size) * jnp.dtype(w_p.dtype).itemsize
        bytes_accessed += int(b_p.size) * 4
    cost = pl.CostEstimate(flops=int(flops),
                           transcendentals=int(transcendentals),
                           bytes_accessed=int(bytes_accessed))

    out = pl.pallas_call(
        functools.partial(_descriminator_kernel,
                          fc5_elementwise=fc5_elementwise),
        out_shape=jax.ShapeDtypeStruct((b_pad, d_out), jnp.float32),
        grid_spec=pltpu.PrefetchScalarGridSpec(
            num_scalar_prefetch=0,
            grid=(grid_len,),
            in_specs=in_specs,
            out_specs=out_spec,
        ),
        compiler_params=pltpu.CompilerParams(
            dimension_semantics=("parallel",)),
        cost_estimate=cost,
    )(x, *flat_params)

    return out[:B] if b_pad != B else out


# ------------------------------------------------------------------- setup ---
def init_params(key, config):
    """PyTorch stores weight as [out, in]; we pre-transpose to [in, out]."""
    params = {}
    layer_dims = [
        ("fc1", config["des_fc1_in"], config["des_fc1_out"]),
        ("fc2", config["des_fc2_in"], config["des_fc2_out"]),
        ("fc3", config["des_fc3_in"], config["des_fc3_out"]),
        ("fc4", config["des_fc4_in"], config["des_fc4_out"]),
        ("fc5", config["des_fc5_in"], config["des_fc5_out"]),
    ]
    for name, d_in, d_out in layer_dims:
        key, kw, kb = jax.random.split(key, 3)
        bound = 1.0 / jnp.sqrt(d_in)  # PyTorch default U(-1/sqrt(in), 1/sqrt(in))
        w = jax.random.uniform(kw, (d_in, d_out), jnp.float32, -bound, bound)
        b = jax.random.uniform(kb, (1, d_out), jnp.float32, -bound, bound)
        params[name] = (w, b)
    return params


def reference_forward(x, params):
    """Pure-JAX f32 reference (eval-mode dropout) for correctness checks."""
    h = x
    for name in ("fc1", "fc2", "fc3", "fc4"):
        w, b = params[name]
        h = jnp.tanh(h @ w + b)
    w, b = params["fc5"]
    return jax.nn.sigmoid(h @ w + b)


# -------------------------------------------------------------------- main ---
if __name__ == "__main__":
    config = {
        "des_fc1_in": 32, "des_fc1_out": 64,
        "des_fc2_in": 64, "des_fc2_out": 64,
        "des_fc3_in": 64, "des_fc3_out": 32,
        "des_fc4_in": 32, "des_fc4_out": 16,
        "des_fc5_in": 16, "des_fc5_out": 1,
    }

    key = jax.random.PRNGKey(0)
    key, kx1, kx2 = jax.random.split(key, 3)
    params = init_params(key, config)

    # Case 1: small aligned batch (single grid step).
    x1 = jax.random.normal(kx1, (16, config["des_fc1_in"]), jnp.float32)
    out1 = jax.block_until_ready(descriminator_forward(x1, params))
    ref1 = reference_forward(x1, params)
    assert out1.shape == (16, config["des_fc5_out"])
    assert bool(jnp.all(jnp.isfinite(out1)))
    # bf16 MXU operands => loosened tolerance vs the f32 reference.
    assert jnp.allclose(out1, ref1, atol=3e-2, rtol=3e-2), "mismatch (B=16)"

    # Case 2: batch not divisible by the tile (exercises padding + grid >= 2).
    x2 = jax.random.normal(kx2, (50, config["des_fc1_in"]), jnp.float32)
    out2 = jax.block_until_ready(descriminator_forward(x2, params))
    ref2 = reference_forward(x2, params)
    assert out2.shape == (50, config["des_fc5_out"])
    assert jnp.allclose(out2, ref2, atol=3e-2, rtol=3e-2), "mismatch (B=50)"

    print("KERNEL_OK")
</pallas_src>

<mosaic_0001>
module attributes {stable_mosaic.version = 11 : i64} {
  func.func @_descriminator_kernel(%arg0: i32, %arg1: memref<16x32xf32, #tpu.memory_space<vmem>>, %arg2: memref<32x64xbf16, #tpu.memory_space<vmem>>, %arg3: memref<1x64xf32, #tpu.memory_space<vmem>>, %arg4: memref<64x64xbf16, #tpu.memory_space<vmem>>, %arg5: memref<1x64xf32, #tpu.memory_space<vmem>>, %arg6: memref<64x32xbf16, #tpu.memory_space<vmem>>, %arg7: memref<1x32xf32, #tpu.memory_space<vmem>>, %arg8: memref<32x16xbf16, #tpu.memory_space<vmem>>, %arg9: memref<1x16xf32, #tpu.memory_space<vmem>>, %arg10: memref<1x16xf32, #tpu.memory_space<vmem>>, %arg11: memref<1x1xf32, #tpu.memory_space<vmem>>, %arg12: memref<16x1xf32, #tpu.memory_space<vmem>>) attributes {dimension_semantics = [#tpu.dimension_semantics<parallel>], iteration_bounds = array<i64: 1>, scalar_prefetch = 0 : i64, scratch_operands = 0 : i64, tpu.core_type = #tpu.core_type<tc>, window_params = [{transform_indices = @transform_0, window_bounds = array<i64: 16, 32>}, {pipeline_mode = #tpu.pipeline_mode<synchronous>, transform_indices = @transform_1, window_bounds = array<i64: 32, 64>}, {pipeline_mode = #tpu.pipeline_mode<synchronous>, transform_indices = @transform_2, window_bounds = array<i64: 1, 64>}, {pipeline_mode = #tpu.pipeline_mode<synchronous>, transform_indices = @transform_3, window_bounds = array<i64: 64, 64>}, {pipeline_mode = #tpu.pipeline_mode<synchronous>, transform_indices = @transform_4, window_bounds = array<i64: 1, 64>}, {pipeline_mode = #tpu.pipeline_mode<synchronous>, transform_indices = @transform_5, window_bounds = array<i64: 64, 32>}, {pipeline_mode = #tpu.pipeline_mode<synchronous>, transform_indices = @transform_6, window_bounds = array<i64: 1, 32>}, {pipeline_mode = #tpu.pipeline_mode<synchronous>, transform_indices = @transform_7, window_bounds = array<i64: 32, 16>}, {pipeline_mode = #tpu.pipeline_mode<synchronous>, transform_indices = @transform_8, window_bounds = array<i64: 1, 16>}, {pipeline_mode = #tpu.pipeline_mode<synchronous>, transform_indices = @transform_9, window_bounds = array<i64: 1, 16>}, {pipeline_mode = #tpu.pipeline_mode<synchronous>, transform_indices = @transform_10, window_bounds = array<i64: 1, 1>}, {transform_indices = @transform_11, window_bounds = array<i64: 16, 1>}]} {
    %c0 = arith.constant 0 : index
    %c0_0 = arith.constant 0 : index
    %0 = vector.load %arg1[%c0, %c0_0] : memref<16x32xf32, #tpu.memory_space<vmem>>, vector<16x32xf32>
    %1 = arith.truncf %0 : vector<16x32xf32> to vector<16x32xbf16>
    %c0_1 = arith.constant 0 : index
    %c0_2 = arith.constant 0 : index
    %2 = vector.load %arg2[%c0_1, %c0_2] : memref<32x64xbf16, #tpu.memory_space<vmem>>, vector<32x64xbf16>
    %cst = arith.constant dense<0.000000e+00> : vector<16x64xf32>
    %3 = tpu.matmul %1, %2, %cst {dimension_numbers = #tpu.dot_dimension_numbers<[1], [0], [0], [1], [0, 0, 1, 1], [], []>} : vector<16x32xbf16>, vector<32x64xbf16>, vector<16x64xf32> -> vector<16x64xf32>
    %c0_3 = arith.constant 0 : index
    %c0_4 = arith.constant 0 : index
    %4 = vector.load %arg3[%c0_3, %c0_4] : memref<1x64xf32, #tpu.memory_space<vmem>>, vector<1x64xf32>
    %5 = vector.broadcast %4 : vector<1x64xf32> to vector<16x64xf32>
    %6 = arith.addf %3, %5 : vector<16x64xf32>
    %7 = math.tanh %6 : vector<16x64xf32>
    %8 = arith.truncf %7 : vector<16x64xf32> to vector<16x64xbf16>
    %c0_5 = arith.constant 0 : index
    %c0_6 = arith.constant 0 : index
    %9 = vector.load %arg4[%c0_5, %c0_6] : memref<64x64xbf16, #tpu.memory_space<vmem>>, vector<64x64xbf16>
    %cst_7 = arith.constant dense<0.000000e+00> : vector<16x64xf32>
    %10 = tpu.matmul %8, %9, %cst_7 {dimension_numbers = #tpu.dot_dimension_numbers<[1], [0], [0], [1], [0, 0, 1, 1], [], []>} : vector<16x64xbf16>, vector<64x64xbf16>, vector<16x64xf32> -> vector<16x64xf32>
    %c0_8 = arith.constant 0 : index
    %c0_9 = arith.constant 0 : index
    %11 = vector.load %arg5[%c0_8, %c0_9] : memref<1x64xf32, #tpu.memory_space<vmem>>, vector<1x64xf32>
    %12 = vector.broadcast %11 : vector<1x64xf32> to vector<16x64xf32>
    %13 = arith.addf %10, %12 : vector<16x64xf32>
    %14 = math.tanh %13 : vector<16x64xf32>
    %15 = arith.truncf %14 : vector<16x64xf32> to vector<16x64xbf16>
    %c0_10 = arith.constant 0 : index
    %c0_11 = arith.constant 0 : index
    %16 = vector.load %arg6[%c0_10, %c0_11] : memref<64x32xbf16, #tpu.memory_space<vmem>>, vector<64x32xbf16>
    %cst_12 = arith.constant dense<0.000000e+00> : vector<16x32xf32>
    %17 = tpu.matmul %15, %16, %cst_12 {dimension_numbers = #tpu.dot_dimension_numbers<[1], [0], [0], [1], [0, 0, 1, 1], [], []>} : vector<16x64xbf16>, vector<64x32xbf16>, vector<16x32xf32> -> vector<16x32xf32>
    %c0_13 = arith.constant 0 : index
    %c0_14 = arith.constant 0 : index
    %18 = vector.load %arg7[%c0_13, %c0_14] : memref<1x32xf32, #tpu.memory_space<vmem>>, vector<1x32xf32>
    %19 = vector.broadcast %18 : vector<1x32xf32> to vector<16x32xf32>
    %20 = arith.addf %17, %19 : vector<16x32xf32>
    %21 = math.tanh %20 : vector<16x32xf32>
    %22 = arith.truncf %21 : vector<16x32xf32> to vector<16x32xbf16>
    %c0_15 = arith.constant 0 : index
    %c0_16 = arith.constant 0 : index
    %23 = vector.load %arg8[%c0_15, %c0_16] : memref<32x16xbf16, #tpu.memory_space<vmem>>, vector<32x16xbf16>
    %cst_17 = arith.constant dense<0.000000e+00> : vector<16x16xf32>
    %24 = tpu.matmul %22, %23, %cst_17 {dimension_numbers = #tpu.dot_dimension_numbers<[1], [0], [0], [1], [0, 0, 1, 1], [], []>} : vector<16x32xbf16>, vector<32x16xbf16>, vector<16x16xf32> -> vector<16x16xf32>
    %c0_18 = arith.constant 0 : index
    %c0_19 = arith.constant 0 : index
    %25 = vector.load %arg9[%c0_18, %c0_19] : memref<1x16xf32, #tpu.memory_space<vmem>>, vector<1x16xf32>
    %26 = vector.broadcast %25 : vector<1x16xf32> to vector<16x16xf32>
    %27 = arith.addf %24, %26 : vector<16x16xf32>
    %28 = math.tanh %27 : vector<16x16xf32>
    %c0_20 = arith.constant 0 : index
    %c0_21 = arith.constant 0 : index
    %29 = vector.load %arg10[%c0_20, %c0_21] : memref<1x16xf32, #tpu.memory_space<vmem>>, vector<1x16xf32>
    %30 = vector.broadcast %29 : vector<1x16xf32> to vector<16x16xf32>
    %31 = arith.mulf %28, %30 : vector<16x16xf32>
    %cst_22 = arith.constant dense<0.000000e+00> : vector<16xf32>
    %32 = vector.multi_reduction <add>, %31, %cst_22 [1] : vector<16x16xf32> to vector<16xf32>
    %33 = vector.shape_cast %32 : vector<16xf32> to vector<16x1xf32>
    %c0_23 = arith.constant 0 : index
    %c0_24 = arith.constant 0 : index
    %34 = vector.load %arg11[%c0_23, %c0_24] : memref<1x1xf32, #tpu.memory_space<vmem>>, vector<1x1xf32>
    %35 = vector.broadcast %34 : vector<1x1xf32> to vector<16x1xf32>
    %36 = arith.addf %33, %35 : vector<16x1xf32>
    %37 = arith.negf %36 : vector<16x1xf32>
    %38 = math.exp %37 : vector<16x1xf32>
    %cst_25 = arith.constant 1.000000e+00 : f32
    %39 = vector.broadcast %cst_25 : f32 to vector<16x1xf32>
    %40 = arith.addf %39, %38 : vector<16x1xf32>
    %41 = arith.divf %39, %40 : vector<16x1xf32>
    %c0_26 = arith.constant 0 : index
    %c0_27 = arith.constant 0 : index
    %42 = vector.load %arg12[%c0_26, %c0_27] : memref<16x1xf32, #tpu.memory_space<vmem>>, vector<16x1xf32>
    tpu.vector_store %arg12[%c0_26, %c0_27], %41 {strides = array<i32>} : memref<16x1xf32, #tpu.memory_space<vmem>>, vector<16x1xf32>,
    return
  }
  func.func @transform_0(%arg0: i32) -> (i32, i32) {
    %c0_i32 = arith.constant 0 : i32
    %c0_i32_0 = arith.constant 0 : i32
    return %arg0, %c0_i32 : i32, i32
  }
  func.func @transform_1(%arg0: i32) -> (i32, i32) {
    %c0_i32 = arith.constant 0 : i32
    %c0_i32_0 = arith.constant 0 : i32
    %c0_i32_1 = arith.constant 0 : i32
    return %c0_i32, %c0_i32_0 : i32, i32
  }
  func.func @transform_2(%arg0: i32) -> (i32, i32) {
    %c0_i32 = arith.constant 0 : i32
    %c0_i32_0 = arith.constant 0 : i32
    %c0_i32_1 = arith.constant 0 : i32
    return %c0_i32, %c0_i32_0 : i32, i32
  }
  func.func @transform_3(%arg0: i32) -> (i32, i32) {
    %c0_i32 = arith.constant 0 : i32
    %c0_i32_0 = arith.constant 0 : i32
    %c0_i32_1 = arith.constant 0 : i32
    return %c0_i32, %c0_i32_0 : i32, i32
  }
  func.func @transform_4(%arg0: i32) -> (i32, i32) {
    %c0_i32 = arith.constant 0 : i32
    %c0_i32_0 = arith.constant 0 : i32
    %c0_i32_1 = arith.constant 0 : i32
    return %c0_i32, %c0_i32_0 : i32, i32
  }
  func.func @transform_5(%arg0: i32) -> (i32, i32) {
    %c0_i32 = arith.constant 0 : i32
    %c0_i32_0 = arith.constant 0 : i32
    %c0_i32_1 = arith.constant 0 : i32
    return %c0_i32, %c0_i32_0 : i32, i32
  }
  func.func @transform_6(%arg0: i32) -> (i32, i32) {
    %c0_i32 = arith.constant 0 : i32
    %c0_i32_0 = arith.constant 0 : i32
    %c0_i32_1 = arith.constant 0 : i32
    return %c0_i32, %c0_i32_0 : i32, i32
  }
  func.func @transform_7(%arg0: i32) -> (i32, i32) {
    %c0_i32 = arith.constant 0 : i32
    %c0_i32_0 = arith.constant 0 : i32
    %c0_i32_1 = arith.constant 0 : i32
    return %c0_i32, %c0_i32_0 : i32, i32
  }
  func.func @transform_8(%arg0: i32) -> (i32, i32) {
    %c0_i32 = arith.constant 0 : i32
    %c0_i32_0 = arith.constant 0 : i32
    %c0_i32_1 = arith.constant 0 : i32
    return %c0_i32, %c0_i32_0 : i32, i32
  }
  func.func @transform_9(%arg0: i32) -> (i32, i32) {
    %c0_i32 = arith.constant 0 : i32
    %c0_i32_0 = arith.constant 0 : i32
    %c0_i32_1 = arith.constant 0 : i32
    return %c0_i32, %c0_i32_0 : i32, i32
  }
  func.func @transform_10(%arg0: i32) -> (i32, i32) {
    %c0_i32 = arith.constant 0 : i32
    %c0_i32_0 = arith.constant 0 : i32
    %c0_i32_1 = arith.constant 0 : i32
    return %c0_i32, %c0_i32_0 : i32, i32
  }
  func.func @transform_11(%arg0: i32) -> (i32, i32) {
    %c0_i32 = arith.constant 0 : i32
    %c0_i32_0 = arith.constant 0 : i32
    return %arg0, %c0_i32 : i32, i32
  }
}

</mosaic_0001>

<bundles_post_ra>
// kernel: descriminator_forward.1
= control target key start
LH: loop header
LB: loop body
LE: loop exit
PB: predicated region body
PF: predicated region fallthrough
CT: control target
= control target key end

     0   :  { %v519_v0 = vmov 0.0   ;;  %vm520_vm0 = vmmov 0   ;;  %vm67_vm1 = vcmask 261120   ;;  %vm154_vm2 = vcmask 523264   ;;  %s671_s1 = inlined_call_operand.vmem [shape: bf16[32,64], index: 1, kind: input, shape index: {}]   ;;  %s672_s0 = inlined_call_operand.vmem [shape: f32[16,32], index: 0, kind: input, shape index: {}]   ;;  %s673_s3 = inlined_call_operand.vmem [shape: bf16[64,64], index: 3, kind: input, shape index: {}]   ;;  %s674_s2 = inlined_call_operand.vmem [shape: f32[1,64], index: 2, kind: input, shape index: {}]   ;;  %s675_s5 = inlined_call_operand.vmem [shape: bf16[64,32], index: 5, kind: input, shape index: {}]   ;;  %s676_s4 = inlined_call_operand.vmem [shape: f32[1,64], index: 4, kind: input, shape index: {}]   ;;  %s677_s7 = inlined_call_operand.vmem [shape: bf16[32,16], index: 7, kind: input, shape index: {}]   ;;  %s678_s6 = inlined_call_operand.vmem [shape: f32[1,32], index: 6, kind: input, shape index: {}]   ;;  %s679_s10 = inlined_call_operand.<no memory space> [shape: f32[1,1], index: 10, kind: input, shape index: {}]   ;;  %s680_s8 = inlined_call_operand.vmem [shape: f32[1,16], index: 8, kind: input, shape index: {}]   ;;  %s681_s9 = inlined_call_operand.vmem [shape: f32[1,16], index: 9, kind: input, shape index: {}]   ;;  %s682_s11 = inlined_call_operand.vmem [shape: f32[16,1], index: 11, kind: output, shape index: {}]  }
   0x1   :  { %441 = vmatprep.subr.bf16.mxu0 %v519_v0  ;;  %v483_v1 = vld [vmem:[%s671_s1] sm:$0xff]   ;;  %445 = vmatprep.mubr.msk.bf16.mxu0 %vm520_vm0, %v519_v0  ;;  %v484_v2 = vld [vmem:[%s671_s1 + $0x8] sm:$0xff]   ;;  %v487_v8 = vld [vmem:[%s673_s3 + $0x10] sm:$0xff]   ;;  %v16_v46 = vstv %s679_s10  ;;  %vm366_vm3 = vcmask 130048   ;;  %vm394_vm4 = vcmask 7168  }
   0x2   :  { %449 = vmatprep.subr.bf16.mxu1 %v519_v0  ;;  %457 = vmatprep.mubr.msk.bf16.mxu1 %vm520_vm0, %v519_v0  ;;  %v41_v3 = vld [vmem:[%s672_s0] sm:$0xff]  ;;  %v42_v4 = vld [vmem:[%s672_s0 + $0x8] sm:$0xff]  ;;  %v488_v9 = vld [vmem:[%s673_s3 + $0x18] sm:$0xff]   ;;  %17 = vst [vmem:[#allocation2] sm:$0x1] %v16_v46 }
   0x3   :  { %442 = vmatpush3.bf16.msra.mxu0 %v483_v1  ;;  %v43_v5 = vpack.c.bf16 %v42_v4, %v41_v3  ;;  %v485_v6 = vld [vmem:[%s673_s3] sm:$0xff]   ;;  %v486_v7 = vld [vmem:[%s673_s3 + $0x8] sm:$0xff]   ;;  %v491_v22 = vld [vmem:[%s675_s5 + $0x10] sm:$0xff]  }
   0x4   :  { %443 = vmatprep.subr.bf16.mxu0 %v519_v0  ;;  %450 = vmatpush3.bf16.msra.mxu1 %v485_v6  ;;  %v401_v10 = vld [vmem:[%s674_s2] ss:$0 sm:$0xff]  ;;  %v490_v21 = vld [vmem:[%s675_s5 + $0x8] sm:$0xff]   ;;  %v492_v23 = vld [vmem:[%s675_s5 + $0x18] sm:$0xff]  }
   0x5   :  { %451 = vmatprep.subr.bf16.mxu1 %v519_v0  ;;  %v489_v20 = vld [vmem:[%s675_s5] sm:$0xff]   ;;  %v494_v35 = vld [vmem:[%s677_s7 + $0x8] sm:$0xff]  }
   0x6   :  { %v405_v24 = vld [vmem:[%s676_s4] ss:$0 sm:$0xff] }
   0x7   :  { %444 = vmatpush3.bf16.msra.mxu0 %v484_v2  ;;  %v493_v34 = vld [vmem:[%s677_s7] sm:$0xff]  }
   0x8   :  { %461 = vmatprep.subr.bf16.mxu0 %v519_v0  ;;  %452 = vmatpush3.bf16.msra.mxu1 %v486_v7  ;;  %v411_v36 = vld [vmem:[%s678_s6] ss:$0 sm:$0xff] }
   0x9   :  { %453 = vmatprep.subr.bf16.mxu1 %v519_v0  ;;  %v417_v47 = vld [vmem:[%s680_s8] ss:$0 sm:$0xff] }
   0xa   :  { %446 = vmatmul.mubr.msk.bf16.vlgmr.msra.gmra.mrb[0].mxu0 %vm67_vm1, %v43_v5  ;;  %v421_v54 = vld [vmem:[%s681_s9] ss:$0 sm:$0xff] }
   0xb   :  { %469 = vmatprep.mubr.msk.bf16.mxu0 %vm520_vm0, %v519_v0  ;;  %462 = vmatpush3.bf16.msra.mxu0 %v489_v20  ;;  %v422_v61 = vld [vmem:[#allocation2] ss:$0 sm:$0xff] }
   0xc   :  { %454 = vmatpush3.bf16.msra.mxu1 %v487_v8  ;;  %463 = vmatprep.subr.bf16.mxu0 %v519_v0 }
   0xd   :  { %455 = vmatprep.subr.bf16.mxu1 %v519_v0 }
   0xf   :  { %464 = vmatpush3.bf16.msra.mxu0 %v490_v21 }
  0x10   :  { %456 = vmatpush3.bf16.msra.mxu1 %v488_v9  ;;  %465 = vmatprep.subr.bf16.mxu0 %v519_v0 }
  0x11   :  { %473 = vmatprep.subr.bf16.mxu1 %v519_v0 }
  0x13   :  { %466 = vmatpush3.bf16.msra.mxu0 %v491_v22 }
  0x14   :  { %467 = vmatprep.subr.bf16.mxu0 %v519_v0 }
  0x17   :  { %468 = vmatpush3.bf16.msra.mxu0 %v492_v23 }
  0xdd   :  { %v105_v11 = vpop.f32.mrb[0].mxu0 }
  0xde   :  { %v106_v12 = vadd.f32 %v401_v10, %v105_v11  ;;  %v447_v13 = vpop.f32.mrb[1].mxu0 }
  0xdf   :  { %v108_v14 = vpop.f32.mrb[2].mxu0 }
  0xe0   :  { %v109_v15 = vadd.f32 %v401_v10, %v108_v14  ;;  %v448_v16 = vpop.f32.mrb[3].mxu0  ;;  %495 = vtanh.f32 %v106_v12 }
  0xe2   :  { %497 = vtanh.f32 %v109_v15 }
  0xea   :  { %v496_v17 = vpop.eup %495 }
  0xec   :  { %v498_v18 = vpop.eup %497 }
  0xed   :  { %v114_v19 = vpack.c.bf16 %v498_v18, %v496_v17 }
  0xef   :  { %458 = vmatmul.mubr.msk.bf16.vlgmr.msra.gmra.mrb[0].mxu1 %vm154_vm2, %v114_v19 }
  0xf0   :  { %477 = vmatprep.mubr.msk.bf16.mxu1 %vm520_vm0, %v519_v0  ;;  %474 = vmatpush3.bf16.msra.mxu1 %v493_v34 }
  0xf1   :  { %475 = vmatprep.subr.bf16.mxu1 %v519_v0 }
  0xf4   :  { %476 = vmatpush3.bf16.msra.mxu1 %v494_v35 }
 0x1c2   :  { %v192_v25 = vpop.f32.mrb[0].mxu1 }
 0x1c3   :  { %v193_v26 = vadd.f32 %v405_v24, %v192_v25  ;;  %v459_v27 = vpop.f32.mrb[1].mxu1 }
 0x1c4   :  { %v195_v28 = vpop.f32.mrb[2].mxu1 }
 0x1c5   :  { %v196_v29 = vadd.f32 %v405_v24, %v195_v28  ;;  %v460_v30 = vpop.f32.mrb[3].mxu1  ;;  %499 = vtanh.f32 %v193_v26 }
 0x1c7   :  { %501 = vtanh.f32 %v196_v29 }
 0x1cf   :  { %v500_v31 = vpop.eup %499 }
 0x1d1   :  { %v502_v32 = vpop.eup %501 }
 0x1d2   :  { %v201_v33 = vpack.c.bf16 %v502_v32, %v500_v31 }
 0x1d4   :  { %470 = vmatmul.mubr.msk.bf16.vlgmr.msra.gmra.mrb[4].mxu0 %vm154_vm2, %v201_v33 }
 0x2a7   :  { %v278_v37 = vpop.f32.mrb[4].mxu0 }
 0x2a8   :  { %v279_v38 = vadd.f32 %v411_v36, %v278_v37  ;;  %v471_v39 = vpop.f32.mrb[5].mxu0 }
 0x2a9   :  { %v281_v40 = vpop.f32.mrb[6].mxu0 }
 0x2aa   :  { %v282_v41 = vadd.f32 %v411_v36, %v281_v40  ;;  %v472_v42 = vpop.f32.mrb[7].mxu0  ;;  %503 = vtanh.f32 %v279_v38 }
 0x2ac   :  { %505 = vtanh.f32 %v282_v41 }
 0x2b4   :  { %v504_v43 = vpop.eup %503 }
 0x2b6   :  { %v506_v44 = vpop.eup %505 }
 0x2b7   :  { %v287_v45 = vpack.c.bf16 %v506_v44, %v504_v43 }
 0x2b9   :  { %478 = vmatmul.mubr.msk.bf16.vlgmr.msra.gmra.mrb[4].mxu1 %vm67_vm1, %v287_v45 }
 0x38c   :  { %v348_v48 = vpop.f32.mrb[4].mxu1 }
 0x38d   :  { %v349_v49 = vadd.f32 %v417_v47, %v348_v48  ;;  %v479_v50 = vpop.f32.mrb[5].mxu1 }
 0x38e   :  { %v351_v51 = vpop.f32.mrb[6].mxu1 }
 0x38f   :  { %507 = vtanh.f32 %v349_v49  ;;  %v352_v52 = vadd.f32 %v417_v47, %v351_v51  ;;  %v480_v53 = vpop.f32.mrb[7].mxu1 }
 0x391   :  { %509 = vtanh.f32 %v352_v52 }
 0x399   :  { %v508_v55 = vpop.eup %507 }
 0x39a   :  { %v364_v56 = vmul.f32 %v508_v55, %v421_v54 }
 0x39b   :  { %v510_v57 = vpop.eup %509 }
 0x39c   :  { %v367_v58 = vsel %vm366_vm3, %v364_v56, 0.0  ;;  %v365_v59 = vmul.f32 %v510_v57, %v421_v54 }
 0x39d   :  { %368 = vadd.xlane.f32.xlu0 %v367_v58 }
 0x39e   :  { %v370_v60 = vsel %vm366_vm3, %v365_v59, 0.0 }
 0x3a1   :  { %371 = vadd.xlane.f32.xlu0 %v370_v60 }
 0x42a   :  { %v369_v62 = vpop.xlane.xlu0 %368 }
 0x42b   :  { %v380_v63 = vadd.f32 %v422_v61, %v369_v62 }
 0x42d   :  { %v423_v0 = vmul.f32 -1.442695, %v380_v63 }
 0x42e   :  { %v372_v1 = vpop.xlane.xlu0 %371 }
 0x42f   :  { %511 = vpow2.f32 %v423_v0  ;;  %v381_v2 = vadd.f32 %v422_v61, %v372_v1 }
 0x431   :  { %v424_v3 = vmul.f32 -1.442695, %v381_v2 }
 0x433   :  { %513 = vpow2.f32 %v424_v3 }
 0x439   :  { %v512_v4 = vpop.eup %511 }
 0x43a   :  { %v388_v5 = vadd.f32 1.0, %v512_v4 }
 0x43c   :  { %515 = vrcp.f32 %v388_v5 }
 0x43d   :  { %v514_v6 = vpop.eup %513 }
 0x43e   :  { %v389_v7 = vadd.f32 1.0, %v514_v6 }
 0x440   :  { %517 = vrcp.f32 %v389_v7 }
 0x446   :  { %v516_v8 = vpop.eup %515 }
 0x447   :  { %395 = vst.msk [vmem:[%s682_s11] sm:$0xff] %vm394_vm4, %v516_v8 }
 0x44a   :  { %v518_v9 = vpop.eup %517 }
 0x44b   :  { %396 = vst.msk [vmem:[%s682_s11 + $0x8] sm:$0xff] %vm394_vm4, %v518_v9 }

</bundles_post_ra>
